<compile_context>
chip_gen: v7x
topology: tpu7x:2x2x1
jax: 0.10.0
libtpu: 0.0.40
codegen_flags: <defaults>
</compile_context>

<pallas_src>
import functools

import jax
import jax.numpy as jnp
from jax.experimental import pallas as pl
from jax.experimental.pallas import tpu as pltpu

# True-f32 matmuls for the tiny W2 fold and the pure-JAX reference check (default
# TPU matmul precision is reduced and would swamp the 1e-5 parity tolerance).
jax.config.update("jax_default_matmul_precision", "highest")

LANE = 128                  # vreg lane width
EDGE_TILE_ROWS = 2048       # (2048,128) f32 = 1 MiB blocks; 3 streams x 2 bufs ~= 6 MiB VMEM
NODE_TILE_CAP = 1024        # max node rows per grid step for kernel 1
NODE_BLOCK_BYTES = 4 << 20  # h-tile budget (x2 double-buffered => 8 MiB, fits v5e scoped VMEM)


def _round_up(x, m):
    return ((x + m - 1) // m) * m


# ---------------- kernel 1: fused (projection + attention) per-node scores -------
# Pure VPU multiply + XLU lane reduction; HBM-bound on the h stream.
def _node_score_kernel(h_ref, w2_ref, fs_ref, ft_ref):
    hv = h_ref[...]                                   # (tile_n, Fin) f32
    w2 = w2_ref[...]                                  # (2, Fin) f32
    fs_ref[...] = jnp.sum(hv * w2[0:1, :], axis=1, keepdims=True)
    ft_ref[...] = jnp.sum(hv * w2[1:2, :], axis=1, keepdims=True)


def node_scores(h, w2):
    """h: (N, Fin), w2: (2, Fin) -> (f_src, f_tgt), each flat (n_pad,) with n_pad >= N."""
    N, Fin = h.shape
    cap = max(8, min(NODE_TILE_CAP, (NODE_BLOCK_BYTES // (4 * Fin)) // 8 * 8))
    tile_n = min(cap, _round_up(N, 8))
    n_pad = _round_up(N, tile_n)
    if n_pad != N:
        h = jnp.pad(h, ((0, n_pad - N), (0, 0)))
    f_src, f_tgt = pl.pallas_call(
        _node_score_kernel,
        out_shape=(jax.ShapeDtypeStruct((n_pad, 1), jnp.float32),
                   jax.ShapeDtypeStruct((n_pad, 1), jnp.float32)),
        grid=(n_pad // tile_n,),
        in_specs=[pl.BlockSpec((tile_n, Fin), lambda i: (i, 0)),
                  pl.BlockSpec((2, Fin), lambda i: (0, 0))],
        out_specs=(pl.BlockSpec((tile_n, 1), lambda i: (i, 0)),
                   pl.BlockSpec((tile_n, 1), lambda i: (i, 0))),
        compiler_params=pltpu.CompilerParams(
            dimension_semantics=("parallel",)),
        cost_estimate=pl.CostEstimate(flops=4 * n_pad * Fin,
                                      transcendentals=0,
                                      bytes_accessed=4 * n_pad * Fin + 8 * n_pad + 8 * Fin),
    )(h, w2)
    return f_src.reshape(-1), f_tgt.reshape(-1)


# ---------------- kernel 2: lane-dense per-edge add + LeakyReLU -------------------
def _edge_kernel(fs_ref, ft_ref, e_ref, *, alpha):
    s = fs_ref[...] + ft_ref[...]
    e_ref[...] = jnp.where(s >= 0, s, alpha * s)      # LeakyReLU(negative_slope=alpha)


def edge_scores(fs, ft, alpha):
    """fs, ft: (rows_pad, 128) f32 -> e: (rows_pad, 128) f32."""
    rows_pad, lane = fs.shape
    tile_r = min(EDGE_TILE_ROWS, rows_pad)
    assert rows_pad % tile_r == 0
    kern = functools.partial(_edge_kernel, alpha=alpha)
    return pl.pallas_call(
        kern,
        out_shape=jax.ShapeDtypeStruct((rows_pad, lane), jnp.float32),
        grid=(rows_pad // tile_r,),
        in_specs=[pl.BlockSpec((tile_r, lane), lambda i: (i, 0)),
                  pl.BlockSpec((tile_r, lane), lambda i: (i, 0))],
        out_specs=pl.BlockSpec((tile_r, lane), lambda i: (i, 0)),
        compiler_params=pltpu.CompilerParams(
            dimension_semantics=("parallel",)),
        cost_estimate=pl.CostEstimate(flops=2 * rows_pad * lane,
                                      transcendentals=0,
                                      bytes_accessed=12 * rows_pad * lane),
    )(fs, ft)


# ---------------- forward pass -----------------------------------------------------
def sparse_graph_attention_forward(h, edge_list, linear_w, attn_w, alpha=0.2):
    """Pallas forward of SparseGraphAttentionLayer (eval semantics).

    h: (N, in_features) f32; edge_list: (2, E) i32
    linear_w: (n_hidden, in_features)   -- torch nn.Linear weight layout
    attn_w:   (1, 2 * n_hidden)
    returns e: (E, 1) f32
    """
    # NOTE: `x = F.dropout(h, ...)` in the torch forward is dead code (its result is
    # never used), so it is omitted here.
    Hn = linear_w.shape[0]
    # Fold the attention vectors into the projection: w2 = [a1; a2] @ W  -> (2, Fin).
    a_rows = jnp.concatenate([attn_w[:, :Hn], attn_w[:, Hn:]], axis=0)        # (2, H)
    w2 = jnp.dot(a_rows, linear_w, precision=jax.lax.Precision.HIGHEST)        # (2, Fin)

    f_src, f_tgt = node_scores(h, w2)                                           # (n_pad,) each

    source, target = edge_list[0], edge_list[1]
    E = source.shape[0]
    rows = pl.cdiv(E, LANE)
    tile_r = min(EDGE_TILE_ROWS, rows)
    rows_pad = _round_up(rows, tile_r)
    e_pad = rows_pad * LANE
    # Pad the int32 index streams (index 0 is always valid) and gather straight into
    # the lane-dense (rows_pad, 128) layout -- no post-gather float pad copies.
    src_p = jnp.pad(source, (0, e_pad - E)).reshape(rows_pad, LANE)
    tgt_p = jnp.pad(target, (0, e_pad - E)).reshape(rows_pad, LANE)
    # Per-edge scalar gather (2*E floats total) stays in XLA.
    # TODO(synk): fuse this gather into the edge kernel (VMEM-resident (2, N) score
    # table) once the in-kernel jnp.take lowering is verified on the target chip.
    fs = jnp.take(f_src, src_p)                                                 # (rows_pad, 128)
    ft = jnp.take(f_tgt, tgt_p)
    e = edge_scores(fs, ft, alpha)                                              # (rows_pad, 128)
    return e.reshape(e_pad, 1)[:E]


if __name__ == "__main__":
    N, Fin, H, E = 16, 16, 32, 32
    alpha = 0.2

    key = jax.random.PRNGKey(0)
    k1, k2, k3, k4, k5 = jax.random.split(key, 5)

    h = jax.random.normal(k1, (N, Fin), dtype=jnp.float32)
    src = jax.random.randint(k2, (E,), 0, N, dtype=jnp.int32)
    tgt = jax.random.randint(k3, (E,), 0, N, dtype=jnp.int32)
    edge_list = jnp.stack([src, tgt], axis=0)

    # Deterministic parameter init (shapes from the module's __init__).
    bound_lin = 1.0 / (Fin ** 0.5)
    linear_w = jax.random.uniform(k4, (H, Fin), jnp.float32,
                                  -bound_lin, bound_lin)       # self.linear.weight
    bound_attn = 1.0 / ((2 * H) ** 0.5)
    attn_w = jax.random.uniform(k5, (1, 2 * H), jnp.float32,
                                -bound_attn, bound_attn)       # self.attn.weight
    # self.weight (Fin, H) and self.a (2H, 1) are declared in __init__ but never
    # used in forward, so they are not materialized here.

    fwd = jax.jit(functools.partial(sparse_graph_attention_forward, alpha=alpha))
    e = jax.block_until_ready(fwd(h, edge_list, linear_w, attn_w))

    # Pure-JAX reference check (same math as the torch forward).
    h_proj_ref = h @ linear_w.T
    a_in = jnp.concatenate([h_proj_ref[src], h_proj_ref[tgt]], axis=1)
    s_ref = a_in @ attn_w.T
    e_ref = jnp.where(s_ref >= 0, s_ref, alpha * s_ref)

    assert e.shape == (E, 1)
    assert jnp.allclose(e, e_ref, atol=1e-5, rtol=1e-5)
    print("KERNEL_OK")
</pallas_src>

<mosaic_0001>
module attributes {stable_mosaic.version = 11 : i64} {
  func.func @_node_score_kernel(%arg0: i32, %arg1: memref<16x16xf32, #tpu.memory_space<vmem>>, %arg2: memref<2x16xf32, #tpu.memory_space<vmem>>, %arg3: memref<16x1xf32, #tpu.memory_space<vmem>>, %arg4: memref<16x1xf32, #tpu.memory_space<vmem>>) attributes {dimension_semantics = [#tpu.dimension_semantics<parallel>], iteration_bounds = array<i64: 1>, scalar_prefetch = 0 : i64, scratch_operands = 0 : i64, tpu.core_type = #tpu.core_type<tc>, window_params = [{transform_indices = @transform_0, window_bounds = array<i64: 16, 16>}, {pipeline_mode = #tpu.pipeline_mode<synchronous>, transform_indices = @transform_1, window_bounds = array<i64: 2, 16>}, {transform_indices = @transform_2, window_bounds = array<i64: 16, 1>}, {transform_indices = @transform_3, window_bounds = array<i64: 16, 1>}]} {
    %c0 = arith.constant 0 : index
    %c0_0 = arith.constant 0 : index
    %0 = vector.load %arg1[%c0, %c0_0] : memref<16x16xf32, #tpu.memory_space<vmem>>, vector<16x16xf32>
    %c0_1 = arith.constant 0 : index
    %c0_2 = arith.constant 0 : index
    %1 = vector.load %arg2[%c0_1, %c0_2] : memref<2x16xf32, #tpu.memory_space<vmem>>, vector<2x16xf32>
    %2 = vector.extract_strided_slice %1 {offsets = [0, 0], sizes = [1, 16], strides = [1, 1]} : vector<2x16xf32> to vector<1x16xf32>
    %3 = vector.broadcast %2 : vector<1x16xf32> to vector<16x16xf32>
    %4 = arith.mulf %0, %3 : vector<16x16xf32>
    %cst = arith.constant dense<0.000000e+00> : vector<16xf32>
    %5 = vector.multi_reduction <add>, %4, %cst [1] : vector<16x16xf32> to vector<16xf32>
    %6 = vector.shape_cast %5 : vector<16xf32> to vector<16x1xf32>
    %c0_3 = arith.constant 0 : index
    %c0_4 = arith.constant 0 : index
    %7 = vector.load %arg3[%c0_3, %c0_4] : memref<16x1xf32, #tpu.memory_space<vmem>>, vector<16x1xf32>
    tpu.vector_store %arg3[%c0_3, %c0_4], %6 {strides = array<i32>} : memref<16x1xf32, #tpu.memory_space<vmem>>, vector<16x1xf32>,
    %8 = vector.extract_strided_slice %1 {offsets = [1, 0], sizes = [1, 16], strides = [1, 1]} : vector<2x16xf32> to vector<1x16xf32>
    %9 = vector.broadcast %8 : vector<1x16xf32> to vector<16x16xf32>
    %10 = arith.mulf %0, %9 : vector<16x16xf32>
    %cst_5 = arith.constant dense<0.000000e+00> : vector<16xf32>
    %11 = vector.multi_reduction <add>, %10, %cst_5 [1] : vector<16x16xf32> to vector<16xf32>
    %12 = vector.shape_cast %11 : vector<16xf32> to vector<16x1xf32>
    %c0_6 = arith.constant 0 : index
    %c0_7 = arith.constant 0 : index
    %13 = vector.load %arg4[%c0_6, %c0_7] : memref<16x1xf32, #tpu.memory_space<vmem>>, vector<16x1xf32>
    tpu.vector_store %arg4[%c0_6, %c0_7], %12 {strides = array<i32>} : memref<16x1xf32, #tpu.memory_space<vmem>>, vector<16x1xf32>,
    return
  }
  func.func @transform_0(%arg0: i32) -> (i32, i32) {
    %c0_i32 = arith.constant 0 : i32
    %c0_i32_0 = arith.constant 0 : i32
    return %arg0, %c0_i32 : i32, i32
  }
  func.func @transform_1(%arg0: i32) -> (i32, i32) {
    %c0_i32 = arith.constant 0 : i32
    %c0_i32_0 = arith.constant 0 : i32
    %c0_i32_1 = arith.constant 0 : i32
    return %c0_i32, %c0_i32_0 : i32, i32
  }
  func.func @transform_2(%arg0: i32) -> (i32, i32) {
    %c0_i32 = arith.constant 0 : i32
    %c0_i32_0 = arith.constant 0 : i32
    return %arg0, %c0_i32 : i32, i32
  }
  func.func @transform_3(%arg0: i32) -> (i32, i32) {
    %c0_i32 = arith.constant 0 : i32
    %c0_i32_0 = arith.constant 0 : i32
    return %arg0, %c0_i32 : i32, i32
  }
}

module attributes {stable_mosaic.version = 11 : i64} {
  func.func @_edge_kernel(%arg0: i32, %arg1: memref<1x128xf32, #tpu.memory_space<vmem>>, %arg2: memref<1x128xf32, #tpu.memory_space<vmem>>, %arg3: memref<1x128xf32, #tpu.memory_space<vmem>>) attributes {dimension_semantics = [#tpu.dimension_semantics<parallel>], iteration_bounds = array<i64: 1>, scalar_prefetch = 0 : i64, scratch_operands = 0 : i64, tpu.core_type = #tpu.core_type<tc>, window_params = [{transform_indices = @transform_0, window_bounds = array<i64: 1, 128>}, {transform_indices = @transform_1, window_bounds = array<i64: 1, 128>}, {transform_indices = @transform_2, window_bounds = array<i64: 1, 128>}]} {
    %c0 = arith.constant 0 : index
    %c0_0 = arith.constant 0 : index
    %0 = vector.load %arg1[%c0, %c0_0] : memref<1x128xf32, #tpu.memory_space<vmem>>, vector<1x128xf32>
    %c0_1 = arith.constant 0 : index
    %c0_2 = arith.constant 0 : index
    %1 = vector.load %arg2[%c0_1, %c0_2] : memref<1x128xf32, #tpu.memory_space<vmem>>, vector<1x128xf32>
    %2 = arith.addf %0, %1 : vector<1x128xf32>
    %cst = arith.constant 0.000000e+00 : f32
    %3 = vector.broadcast %cst : f32 to vector<1x128xf32>
    %4 = arith.cmpf oge, %2, %3 : vector<1x128xf32>
    %cst_3 = arith.constant 2.000000e-01 : f32
    %5 = vector.broadcast %cst_3 : f32 to vector<1x128xf32>
    %6 = arith.mulf %5, %2 : vector<1x128xf32>
    %7 = arith.select %4, %2, %6 : vector<1x128xi1>, vector<1x128xf32>
    %c0_4 = arith.constant 0 : index
    %c0_5 = arith.constant 0 : index
    %8 = vector.load %arg3[%c0_4, %c0_5] : memref<1x128xf32, #tpu.memory_space<vmem>>, vector<1x128xf32>
    tpu.vector_store %arg3[%c0_4, %c0_5], %7 {strides = array<i32>} : memref<1x128xf32, #tpu.memory_space<vmem>>, vector<1x128xf32>,
    return
  }
  func.func @transform_0(%arg0: i32) -> (i32, i32) {
    %c0_i32 = arith.constant 0 : i32
    %c0_i32_0 = arith.constant 0 : i32
    return %arg0, %c0_i32 : i32, i32
  }
  func.func @transform_1(%arg0: i32) -> (i32, i32) {
    %c0_i32 = arith.constant 0 : i32
    %c0_i32_0 = arith.constant 0 : i32
    return %arg0, %c0_i32 : i32, i32
  }
  func.func @transform_2(%arg0: i32) -> (i32, i32) {
    %c0_i32 = arith.constant 0 : i32
    %c0_i32_0 = arith.constant 0 : i32
    return %arg0, %c0_i32 : i32, i32
  }
}

</mosaic_0001>

<bundles_post_ra>
// kernel: sparse_graph_attention_forward.2
= control target key start
LH: loop header
LB: loop body
LE: loop exit
PB: predicated region body
PF: predicated region fallthrough
CT: control target
= control target key end

     0   :  { %v16_v0 = vlaneseq  ;;  %vm22_vm0 = vcmask 130048   ;;  %vm29_vm1 = vcmask 7168   ;;  %s95_s1 = inlined_call_operand.vmem [shape: f32[2,16], index: 1, kind: input, shape index: {}]   ;;  %s96_s0 = inlined_call_operand.vmem [shape: f32[16,16], index: 0, kind: input, shape index: {}]   ;;  %s97_s3 = inlined_call_operand.vmem [shape: f32[16,1], index: 3, kind: output, shape index: {1}]   ;;  %s98_s2 = inlined_call_operand.vmem [shape: f32[16,1], index: 2, kind: output, shape index: {0}]  }
   0x1   :  { %v15_v2 = vld [vmem:[%s95_s1] sm:$0x3]  ;;  %v14_v6 = vld [vmem:[%s96_s0 + $0x8] sm:$0xff] }
   0x2   :  { %v17_v1 = vshrl.u32 %v16_v0, 7  ;;  %v13_v5 = vld [vmem:[%s96_s0] sm:$0xff] }
   0x4   :  { %v34_v3 = vsub.s32 1, %v17_v1  ;;  %v18_v4 = vsub.s32 0, %v17_v1 }
   0x6   :  { %v35_v7 = vrot.slane %v15_v2, %v34_v3  ;;  %v19_v8 = vrot.slane %v15_v2, %v18_v4 }
   0x8   :  { %v36_v9 = vmul.f32 %v35_v7, %v13_v5  ;;  %v20_v10 = vmul.f32 %v19_v8, %v13_v5  ;;  %v37_v11 = vmul.f32 %v35_v7, %v14_v6  ;;  %v21_v12 = vmul.f32 %v19_v8, %v14_v6 }
   0xa   :  { %v38_v13 = vsel %vm22_vm0, %v36_v9, 0.0  ;;  %v23_v14 = vsel %vm22_vm0, %v20_v10, 0.0  ;;  %v41_v15 = vsel %vm22_vm0, %v37_v11, 0.0  ;;  %v26_v16 = vsel %vm22_vm0, %v21_v12, 0.0 }
   0xb   :  { %39 = vadd.xlane.f32.xlu1 %v38_v13  ;;  %24 = vadd.xlane.f32.xlu0 %v23_v14 }
   0xf   :  { %42 = vadd.xlane.f32.xlu1 %v41_v15  ;;  %27 = vadd.xlane.f32.xlu0 %v26_v16 }
  0x98   :  { %v40_v17 = vpop.xlane.xlu1 %39  ;;  %v25_v18 = vpop.xlane.xlu0 %24 }
  0x99   :  { %44 = vst.msk [vmem:[%s97_s3] sm:$0xff] %vm29_vm1, %v40_v17  ;;  %30 = vst.msk [vmem:[%s98_s2] sm:$0xff] %vm29_vm1, %v25_v18 }
  0x9c   :  { %v43_v19 = vpop.xlane.xlu1 %42  ;;  %v28_v20 = vpop.xlane.xlu0 %27 }
  0x9d   :  { %45 = vst.msk [vmem:[%s97_s3 + $0x8] sm:$0xff] %vm29_vm1, %v43_v19  ;;  %31 = vst.msk [vmem:[%s98_s2 + $0x8] sm:$0xff] %vm29_vm1, %v28_v20 }

// kernel: sparse_graph_attention_forward.3
= control target key start
LH: loop header
LB: loop body
LE: loop exit
PB: predicated region body
PF: predicated region fallthrough
CT: control target
= control target key end

     0   :  { %s46_s0 = inlined_call_operand.vmem [shape: f32[1,128], index: 0, kind: input, shape index: {}]   ;;  %s47_s1 = inlined_call_operand.vmem [shape: f32[1,128], index: 1, kind: input, shape index: {}]   ;;  %s48_s2 = inlined_call_operand.vmem [shape: f32[1,128], index: 2, kind: output, shape index: {}]  }
   0x1   :  { %v11_v0 = vld [vmem:[%s46_s0] sm:$0x1] }
   0x2   :  { %v12_v1 = vld [vmem:[%s47_s1] sm:$0x1] }
   0x3   :  { %v13_v2 = vadd.f32 %v12_v1, %v11_v0 }
   0x5   :  { %vm14_vm0 = vcmp.ge.f32.partialorder %v13_v2, 0.0  ;;  %v15_v3 = vmul.f32 0.2, %v13_v2 }
   0x7   :  { %v16_v4 = vsel %vm14_vm0, %v13_v2, %v15_v3 }
   0x8   :  { %17 = vst [vmem:[%s48_s2] sm:$0x1] %v16_v4 }

</bundles_post_ra>
